<compile_context>
chip_gen: v7x
topology: tpu7x:2x2x1
jax: 0.10.0
libtpu: 0.0.40
codegen_flags: <defaults>
</compile_context>

<pallas_src>
import jax
import jax.numpy as jnp
from jax.experimental import pallas as pl
from jax.experimental.pallas import tpu as pltpu

_LANES = 128
_SUBLANES = 8
_MAX_BLOCK_ROWS = 2048   # 2048 x 128 x 4 B = 1 MiB per input per pipeline buffer
_NUM_SPLITS = 2          # leading "parallel" axis (both TCs on v7x; no-op cost elsewhere)


def _round_up(n, m):
    return ((n + m - 1) // m) * m


def _sse_partial_kernel(x_ref, t_ref, out_ref, acc_ref):
    j = pl.program_id(1)

    # Zero the resident vreg-shaped accumulator at the start of each split.
    @pl.when(j == 0)
    def _():
        acc_ref[...] = jnp.zeros_like(acc_ref)

    # Upcast in-register (VPU has slack under the DMA); keeps HBM traffic at
    # the input dtype width (bf16 inputs halve HBM bytes).
    d = x_ref[...].astype(jnp.float32) - t_ref[...].astype(jnp.float32)
    sq = d * d
    # Vreg-shaped partial accumulation: reduce only along block rows via a
    # sublane-aligned reshape (pure VPU adds); the cross-lane reduce is
    # deferred to the wrapper.
    acc_ref[...] += sq.reshape(-1, _SUBLANES, _LANES).sum(axis=0)

    # Emit this split's (8, 128) partial once, at the last reduction step.
    @pl.when(j == pl.num_programs(1) - 1)
    def _():
        out_ref[...] = acc_ref[...]


@jax.jit
def mse_loss_pallas(x, target):
    """Computes mean((x - target)^2) with a Pallas TPU reduction kernel."""
    assert x.shape == target.shape, "input/target shape mismatch"
    total = x.size

    xf = x.reshape(-1)
    tf = target.reshape(-1)

    rows = (total + _LANES - 1) // _LANES
    rows = _round_up(rows, _SUBLANES)
    block_rows = min(_MAX_BLOCK_ROWS, rows)
    padded_rows = _round_up(rows, _NUM_SPLITS * block_rows)
    padded_total = padded_rows * _LANES

    # Pad both operands identically with zeros: padded elements contribute 0
    # to the sum of squared differences, so dividing by the true `total`
    # still yields the exact mean.
    pad = padded_total - total
    if pad:
        xf = jnp.pad(xf, (0, pad))
        tf = jnp.pad(tf, (0, pad))
    x2 = xf.reshape(padded_rows, _LANES)
    t2 = tf.reshape(padded_rows, _LANES)

    tiles_per_split = padded_rows // (block_rows * _NUM_SPLITS)
    in_map = lambda i, j: (i * tiles_per_split + j, 0)

    bytes_accessed = (
        padded_total * (x.dtype.itemsize + target.dtype.itemsize)
        + _NUM_SPLITS * _SUBLANES * _LANES * 4
    )

    partials = pl.pallas_call(
        _sse_partial_kernel,
        out_shape=jax.ShapeDtypeStruct(
            (_NUM_SPLITS, _SUBLANES, _LANES), jnp.float32
        ),
        grid_spec=pltpu.PrefetchScalarGridSpec(
            num_scalar_prefetch=0,
            grid=(_NUM_SPLITS, tiles_per_split),
            in_specs=[
                pl.BlockSpec((block_rows, _LANES), in_map),
                pl.BlockSpec((block_rows, _LANES), in_map),
            ],
            out_specs=pl.BlockSpec(
                (None, _SUBLANES, _LANES), lambda i, j: (i, 0, 0)
            ),
            scratch_shapes=[pltpu.VMEM((_SUBLANES, _LANES), jnp.float32)],
        ),
        compiler_params=pltpu.CompilerParams(
            dimension_semantics=("parallel", "arbitrary"),
            vmem_limit_bytes=32 * 1024 * 1024,
        ),
        cost_estimate=pl.CostEstimate(
            flops=3 * padded_total,
            transcendentals=0,
            bytes_accessed=bytes_accessed,
        ),
    )(x2, t2)

    # Tiny final reduction (2 vregs) + mean in plain JAX.
    return jnp.sum(partials) * (1.0 / total)


class ContentLoss:
    """JAX/Pallas port of the PyTorch ContentLoss module."""

    def __init__(self, target):
        # target.detach() -> stop gradients through the captured target.
        self.target = jax.lax.stop_gradient(jnp.asarray(target))
        # mirrors F.mse_loss(target, target) == 0.0 at init
        self.loss = mse_loss_pallas(self.target, self.target)

    def __call__(self, x):
        self.loss = mse_loss_pallas(x, self.target)
        return x  # pass-through, exactly like the PyTorch module


if __name__ == "__main__":
    # Deterministic small inputs: NCHW, batch=2, channels=4, spatial=16x16
    key = jax.random.PRNGKey(0)
    k_t, k_x = jax.random.split(key)
    target = jax.random.normal(k_t, (2, 4, 16, 16), dtype=jnp.float32)
    x = jax.random.normal(k_x, (2, 4, 16, 16), dtype=jnp.float32)

    module = ContentLoss(target)
    out = module(x)

    out = jax.block_until_ready(out)
    loss = jax.block_until_ready(module.loss)

    # Correctness check against plain-JAX reference (F.mse_loss default: mean)
    ref_loss = jnp.mean((x - target) ** 2)
    assert out.shape == x.shape and out.dtype == x.dtype
    assert bool(jnp.allclose(out, x))
    assert bool(jnp.allclose(loss, ref_loss, rtol=1e-5, atol=1e-6))

    # Extra check: a shape that is NOT a multiple of 8*128 (padding path).
    k3, k4 = jax.random.split(k_x)
    t_odd = jax.random.normal(k3, (1, 3, 13, 17), dtype=jnp.float32)
    x_odd = jax.random.normal(k4, (1, 3, 13, 17), dtype=jnp.float32)
    loss_odd = jax.block_until_ready(mse_loss_pallas(x_odd, t_odd))
    ref_odd = jnp.mean((x_odd - t_odd) ** 2)
    assert bool(jnp.allclose(loss_odd, ref_odd, rtol=1e-5, atol=1e-6))

    print("KERNEL_OK")
</pallas_src>

<mosaic_0001>
module attributes {stable_mosaic.version = 11 : i64} {
  func.func @_sse_partial_kernel(%arg0: i32, %arg1: i32, %arg2: memref<16x128xf32, #tpu.memory_space<vmem>>, %arg3: memref<16x128xf32, #tpu.memory_space<vmem>>, %arg4: memref<1x8x128xf32, #tpu.memory_space<vmem>>, %arg5: memref<8x128xf32, #tpu.memory_space<vmem>>) attributes {dimension_semantics = [#tpu.dimension_semantics<parallel>, #tpu.dimension_semantics<arbitrary>], iteration_bounds = array<i64: 2, 1>, scalar_prefetch = 0 : i64, scratch_operands = 1 : i64, tpu.core_type = #tpu.core_type<tc>, window_params = [{transform_indices = @transform_0, window_bounds = array<i64: 16, 128>}, {transform_indices = @transform_1, window_bounds = array<i64: 16, 128>}, {transform_indices = @transform_2, window_bounds = array<i64: 1, 8, 128>}]} {
    %c0_i32 = arith.constant 0 : i32
    %0 = arith.cmpi eq, %arg1, %c0_i32 : i32
    %1 = arith.extui %0 : i1 to i32
    %c0_i32_0 = arith.constant 0 : i32
    %2 = arith.cmpi ne, %1, %c0_i32_0 : i32
    scf.if %2 {
      %cst_10 = arith.constant 0.000000e+00 : f32
      %15 = vector.broadcast %cst_10 : f32 to vector<8x128xf32>
      %c0_11 = arith.constant 0 : index
      %c0_12 = arith.constant 0 : index
      %16 = vector.load %arg5[%c0_11, %c0_12] : memref<8x128xf32, #tpu.memory_space<vmem>>, vector<8x128xf32>
      tpu.vector_store %arg5[%c0_11, %c0_12], %15 {strides = array<i32>} : memref<8x128xf32, #tpu.memory_space<vmem>>, vector<8x128xf32>,
    } else {
    }
    %c0 = arith.constant 0 : index
    %c0_1 = arith.constant 0 : index
    %3 = vector.load %arg2[%c0, %c0_1] : memref<16x128xf32, #tpu.memory_space<vmem>>, vector<16x128xf32>
    %c0_2 = arith.constant 0 : index
    %c0_3 = arith.constant 0 : index
    %4 = vector.load %arg3[%c0_2, %c0_3] : memref<16x128xf32, #tpu.memory_space<vmem>>, vector<16x128xf32>
    %5 = arith.subf %3, %4 : vector<16x128xf32>
    %6 = arith.mulf %5, %5 : vector<16x128xf32>
    %c0_4 = arith.constant 0 : index
    %c0_5 = arith.constant 0 : index
    %7 = vector.load %arg5[%c0_4, %c0_5] : memref<8x128xf32, #tpu.memory_space<vmem>>, vector<8x128xf32>
    %8 = vector.shape_cast %6 : vector<16x128xf32> to vector<2x8x128xf32>
    %cst = arith.constant dense<0.000000e+00> : vector<8x128xf32>
    %9 = vector.multi_reduction <add>, %8, %cst [0] : vector<2x8x128xf32> to vector<8x128xf32>
    %10 = arith.addf %7, %9 : vector<8x128xf32>
    %c0_6 = arith.constant 0 : index
    %c0_7 = arith.constant 0 : index
    %11 = vector.load %arg5[%c0_6, %c0_7] : memref<8x128xf32, #tpu.memory_space<vmem>>, vector<8x128xf32>
    tpu.vector_store %arg5[%c0_6, %c0_7], %10 {strides = array<i32>} : memref<8x128xf32, #tpu.memory_space<vmem>>, vector<8x128xf32>,
    %c0_i32_8 = arith.constant 0 : i32
    %12 = arith.cmpi eq, %arg1, %c0_i32_8 : i32
    %13 = arith.extui %12 : i1 to i32
    %c0_i32_9 = arith.constant 0 : i32
    %14 = arith.cmpi ne, %13, %c0_i32_9 : i32
    scf.if %14 {
      %c0_10 = arith.constant 0 : index
      %c0_11 = arith.constant 0 : index
      %15 = vector.load %arg5[%c0_10, %c0_11] : memref<8x128xf32, #tpu.memory_space<vmem>>, vector<8x128xf32>
      %c0_12 = arith.constant 0 : index
      %c0_13 = arith.constant 0 : index
      %c0_14 = arith.constant 0 : index
      %16 = vector.load %arg4[%c0_12, %c0_13, %c0_14] : memref<1x8x128xf32, #tpu.memory_space<vmem>>, vector<1x8x128xf32>
      %17 = vector.shape_cast %16 : vector<1x8x128xf32> to vector<8x128xf32>
      %18 = vector.shape_cast %15 : vector<8x128xf32> to vector<1x8x128xf32>
      tpu.vector_store %arg4[%c0_12, %c0_13, %c0_14], %18 {strides = array<i32>} : memref<1x8x128xf32, #tpu.memory_space<vmem>>, vector<1x8x128xf32>,
    } else {
    }
    return
  }
  func.func @transform_0(%arg0: i32, %arg1: i32) -> (i32, i32) {
    %c1_i32 = arith.constant 1 : i32
    %0 = arith.muli %arg0, %c1_i32 : i32
    %1 = arith.addi %0, %arg1 : i32
    %c0_i32 = arith.constant 0 : i32
    %c0_i32_0 = arith.constant 0 : i32
    return %1, %c0_i32 : i32, i32
  }
  func.func @transform_1(%arg0: i32, %arg1: i32) -> (i32, i32) {
    %c1_i32 = arith.constant 1 : i32
    %0 = arith.muli %arg0, %c1_i32 : i32
    %1 = arith.addi %0, %arg1 : i32
    %c0_i32 = arith.constant 0 : i32
    %c0_i32_0 = arith.constant 0 : i32
    return %1, %c0_i32 : i32, i32
  }
  func.func @transform_2(%arg0: i32, %arg1: i32) -> (i32, i32, i32) {
    %c0_i32 = arith.constant 0 : i32
    %c0_i32_0 = arith.constant 0 : i32
    %c0_i32_1 = arith.constant 0 : i32
    return %arg0, %c0_i32, %c0_i32_0 : i32, i32, i32
  }
}

</mosaic_0001>

<bundles_post_ra>
// kernel: mse_loss_pallas.1
= control target key start
LH: loop header
LB: loop body
LE: loop exit
PB: predicated region body
PF: predicated region fallthrough
CT: control target
= control target key end

     0   :  { %s362_s9 = smov 0   ;;  %s364_s10 = smov 0   ;;  %s395_s0 = inlined_call_operand.vmem [shape: f32[32,128], index: 0, kind: input, shape index: {}]   ;;  %s396_s1 = inlined_call_operand.vmem [shape: f32[32,128], index: 1, kind: input, shape index: {}]   ;;  %s397_s2 = inlined_call_operand.vmem [shape: f32[2,8,128], index: 2, kind: output, shape index: {}]  }
   0x1   :  { %s366_s11 = smov 0  }
   0x2 LB: > { %s24_s12 = sadd.s32 1, %s341_s10  ;;  %p291_p0 = scmp.ge.s32.totalorder %s345_s11, 1  ;;  %s345_s11 = sphi %s366_s11, %s12_s11   ;;  %s341_s10 = sphi %s364_s10, %s399_s10   ;;  %s337_s9 = sphi %s362_s9, %s398_s9  }
   0x3   : > { %p26_p1 = scmp.ge.s32.totalorder %s24_s12, 2  ;;  %p144_p2 = scmp.lt.s32.totalorder %s345_s11, 3 }
   0x5   : > { %s401_s12 = smov (%p26_p1, %s24_s12), 0  ;;  %p145_p3 = pnand %p291_p0, %p144_p2 }
   0x6   : > { %s292_s13 = sshll.u32 (!%p145_p3), %s337_s9, 1  ;;  %p188_p4 = scmp.lt.s32.totalorder (!%p145_p3), %s337_s9, 1 }
   0x7   : > { %148 = sbr.rel (%p145_p3) target bundleno = 26 (0x1a), region = 28  ;;  %p174_p5 = scmp.lt.s32.totalorder (!%p145_p3), %s292_s13, 3 }
   0xe   : > { %s403_s13 = smov (!%p174_p5, %s292_s13), 3  ;;  %s405_s9 = smov (!%p188_p4, %s337_s9), 1 }
   0xf   : > { %s293_s14 = sshll.u32 %s403_s13, 3  ;;  %s296_s21 = sshll.u32 %s405_s9, 3 }
  0x10   : > { %s177_s17 = scalar_lea.vmem %s395_s0, %s293_s14  ;;  %s185_s20 = scalar_lea.vmem %s396_s1, %s293_s14 }
  0x11   : > { %v197_v0 = vld [vmem:[%s177_s17] sm:$0xff]  ;;  %v198_v1 = vld [vmem:[%s177_s17 + $0x8] sm:$0xff]  ;;  %s191_s24 = scalar_lea.vmem %s397_s2, %s296_s21 }
  0x12   : > { %v199_v2 = vld [vmem:[%s185_s20] sm:$0xff]  ;;  %v200_v3 = vld [vmem:[%s185_s20 + $0x8] sm:$0xff] }
  0x13   : > { %v201_v4 = vsub.f32 %v197_v0, %v199_v2  ;;  %v202_v5 = vsub.f32 %v198_v1, %v200_v3 }
  0x15   : > { %v203_v6 = vmul.f32 %v201_v4, %v201_v4  ;;  %v204_v7 = vmul.f32 %v202_v5, %v202_v5 }
  0x17   : > { %v206_v8 = vadd.f32 %v204_v7, %v203_v6 }
  0x19   : > { %213 = vst [vmem:[%s191_s24] sm:$0xff] %v206_v8 }
  0x1a PF: > { %s12_s11 = sadd.s32 1, %s345_s11   ;;  %s398_s9 = smov %s341_s10 }
  0x1b   : > { %p9_p6 = scmp.ge.s32.totalorder %s12_s11, 4   ;;  %s399_s10 = smov %s401_s12 }
  0x1d   :  { %11 = sbr.rel (!%p9_p6) target bundleno = 2 (0x2), region = 69 }

</bundles_post_ra>
